<compile_context>
chip_gen: v5e
topology: v5e:2x2
jax: 0.10.0
libtpu: 0.0.40
codegen_flags: <defaults>
</compile_context>

<pallas_src>
import functools
import numpy as np
import jax
import jax.numpy as jnp
from jax.experimental import pallas as pl
from jax.experimental.pallas import tpu as pltpu


def _round_up(x, m):
    return ((x + m - 1) // m) * m


# ----------------------------------------------------------------------------
# Pallas kernel: fused (bf16 hi/lo) matmul + bias + LayerNorm per activation tile
# ----------------------------------------------------------------------------
def pxby_kernel(x_ref, w_hi_ref, w_lo_ref, b_ref, gamma_ref, beta_ref, o_ref):
    x = x_ref[...]                                                     # (tm, Fp) bf16
    # Two bf16 MXU passes with f32 accumulation ~= exact f32 matmul of the
    # (bf16-rounded) activations against the f32 fused weight.
    h = jnp.dot(x, w_hi_ref[...], preferred_element_type=jnp.float32)  # (tm, D)
    h = h + jnp.dot(x, w_lo_ref[...], preferred_element_type=jnp.float32)
    h = h + b_ref[...]

    # LayerNorm over the last dim (eps=1e-5, biased variance, like torch).
    mean = jnp.mean(h, axis=-1, keepdims=True)
    var = jnp.mean((h - mean) ** 2, axis=-1, keepdims=True)
    hn = (h - mean) * jax.lax.rsqrt(var + 1e-5)
    o_ref[...] = (hn * gamma_ref[...] + beta_ref[...]).astype(o_ref.dtype)


def pxby_pallas_call(x_pad, w_hi, w_lo, b, gamma, beta, *, tm):
    BLp, Fp = x_pad.shape
    D = w_hi.shape[1]
    assert BLp % tm == 0
    grid = (BLp // tm,)

    flops = 2 * 2 * BLp * Fp * D                      # two bf16 matmul passes
    bytes_accessed = (BLp * Fp * x_pad.dtype.itemsize  # activation stream (bf16)
                      + BLp * D * 4                    # output (f32)
                      + 2 * Fp * D * 2 + 3 * D * 4)    # resident params

    return pl.pallas_call(
        pxby_kernel,
        out_shape=jax.ShapeDtypeStruct((BLp, D), jnp.float32),
        grid=grid,
        in_specs=[
            pl.BlockSpec((tm, Fp), lambda i: (i, 0)),   # activation tile (bf16)
            pl.BlockSpec((Fp, D), lambda i: (0, 0)),    # fused weight hi (resident)
            pl.BlockSpec((Fp, D), lambda i: (0, 0)),    # fused weight lo (resident)
            pl.BlockSpec((1, D), lambda i: (0, 0)),     # fused bias
            pl.BlockSpec((1, D), lambda i: (0, 0)),     # LayerNorm gamma
            pl.BlockSpec((1, D), lambda i: (0, 0)),     # LayerNorm beta
        ],
        out_specs=pl.BlockSpec((tm, D), lambda i: (i, 0)),
        compiler_params=pltpu.CompilerParams(dimension_semantics=("parallel",)),
        cost_estimate=pl.CostEstimate(flops=flops, transcendentals=BLp,
                                      bytes_accessed=bytes_accessed),
    )(x_pad, w_hi, w_lo, b, gamma, beta)


# ----------------------------------------------------------------------------
# One-time parameter folding (runs at init/param-load time, NOT per forward)
# ----------------------------------------------------------------------------
def build_conv_matrix(conv_w, k, e_model):
    """Fold a kxk 'same' Conv2d (OIHW weights) into a (F, F) matrix W_T such that
    y_flat = x_flat @ W_T, with flat index = c*k*k + i*k + j (channel-major)."""
    F = e_model * k * k
    pad = k // 2
    w = np.asarray(conv_w, dtype=np.float64)
    W_T = np.zeros((F, F), dtype=np.float64)
    for co in range(e_model):
        for i in range(k):
            for j in range(k):
                out_idx = co * k * k + i * k + j
                for ci in range(e_model):
                    for di in range(k):
                        for dj in range(k):
                            ii, jj = i + di - pad, j + dj - pad
                            if 0 <= ii < k and 0 <= jj < k:
                                in_idx = ci * k * k + ii * k + jj
                                W_T[in_idx, out_idx] = w[co, ci, di, dj]
    return W_T


def fold_params(params, *, k):
    """Fold conv + sigmoid(alpha) gating + projection into one (F_pad, dim) matrix
    (shipped as a bf16 hi/lo pair) and one (dim,) bias, with rows permuted to the
    direct (row, col, channel) gather ordering and zero-padded to 128 lanes."""
    e_model = params['emb_table'].shape[1]
    dim = params['proj_w'].shape[0]
    F = e_model * k * k
    Fp = _round_up(F, 128)

    Wc = build_conv_matrix(params['conv_w'], k, e_model)                      # (F, F)
    g = np.tile(np.asarray(jax.nn.sigmoid(params['alpha']),
                           np.float64).reshape(k * k), e_model)               # (F,)
    bconv = np.repeat(np.asarray(params['conv_b'], np.float64), k * k)        # (F,)
    Wp = np.asarray(params['proj_w'], np.float64).T                           # (F, D)
    bp = np.asarray(params['proj_b'], np.float64)                             # (D,)

    # h = x @ (diag(g) Wp + Wc diag(1-g) Wp) + ((1-g)*bconv) @ Wp + bp   (exact)
    W_fused = g[:, None] * Wp + Wc @ ((1.0 - g)[:, None] * Wp)                # (F, D)
    b_fused = ((1.0 - g) * bconv) @ Wp + bp                                   # (D,)

    # Fold the NCHW permute into the row order: new flat index = (i*k + j)*e + c
    perm = np.arange(F).reshape(e_model, k, k).transpose(1, 2, 0).reshape(F)
    W_fused = W_fused[perm, :]

    # Zero-pad the contraction dim so the activation tile is (tm, 128).
    W_pad = np.zeros((Fp, dim), np.float32)
    W_pad[:F] = W_fused.astype(np.float32)

    # bf16 hi/lo split: W_pad ~= w_hi + w_lo to ~f32 accuracy.
    w_f32 = jnp.asarray(W_pad, jnp.float32)
    w_hi = w_f32.astype(jnp.bfloat16)
    w_lo = (w_f32 - w_hi.astype(jnp.float32)).astype(jnp.bfloat16)

    return dict(
        emb_table=params['emb_table'].astype(jnp.bfloat16),   # gather writes bf16
        w_hi=w_hi,
        w_lo=w_lo,
        b=jnp.asarray(b_fused, jnp.float32).reshape(1, dim),
        gamma=params['ln_g'].reshape(1, dim),
        beta=params['ln_b'].reshape(1, dim),
    )


def init_params(key, vocab_size, dim, k):
    e_model = max(9, dim // (k * k))
    ks = jax.random.split(key, 6)
    params = dict(
        emb_table=jax.random.normal(ks[0], (vocab_size, e_model), jnp.float32) * 0.5,
        alpha=jax.random.uniform(ks[1], (1, 1, k, k), jnp.float32),           # torch.rand
        conv_w=jax.random.normal(ks[2], (e_model, e_model, k, k), jnp.float32) * 0.1,
        conv_b=jax.random.normal(ks[3], (e_model,), jnp.float32) * 0.1,
        proj_w=jax.random.normal(ks[4], (dim, e_model * k * k), jnp.float32) * 0.05,
        proj_b=jax.random.normal(ks[5], (dim,), jnp.float32) * 0.05,
        ln_g=jnp.ones((dim,), jnp.float32),
        ln_b=jnp.zeros((dim,), jnp.float32),
    )
    return params, e_model


# ----------------------------------------------------------------------------
# Forward (jittable: folding happens outside; only gather + pad + kernel here)
# ----------------------------------------------------------------------------
@functools.partial(jax.jit, static_argnames=("k", "tm"))
def pxby_embed_forward(tokens, fused, *, k=3, tm=2048):
    """Pallas implementation of PxByEmbed.forward (is_pemb=True path)."""
    B, L, M, N = tokens.shape
    assert M == N == k
    emb_table = fused['emb_table']
    e_model = emb_table.shape[1]
    Fp, D = fused['w_hi'].shape
    F = e_model * k * k
    BL = B * L

    # nn.Embedding gather (data-dependent gather kept in plain JAX as glue).
    # Flatten directly in (row, col, channel) order -- the permute is folded
    # into the fused weight's row order, so no transpose is materialized.
    emb = jnp.take(emb_table, tokens.reshape(BL, M * N), axis=0)       # (BL, k*k, e) bf16
    x = emb.reshape(BL, F)

    # Pad rows to the grid tile and the contraction dim to 128 lanes.
    tm_eff = min(tm, max(8, _round_up(BL, 8)))
    BLp = _round_up(BL, tm_eff)
    x = jnp.pad(x, ((0, BLp - BL), (0, Fp - F)))

    out = pxby_pallas_call(x, fused['w_hi'], fused['w_lo'], fused['b'],
                           fused['gamma'], fused['beta'], tm=tm_eff)
    return out[:BL].reshape(B, L, D)


# ----------------------------------------------------------------------------
# Pure-JAX reference (mirrors the PyTorch forward) for correctness check
# ----------------------------------------------------------------------------
def pxby_embed_reference(tokens, params, *, k=3):
    B, L, M, N = tokens.shape
    BL = B * L
    emb = jnp.take(params['emb_table'], tokens.reshape(BL, M, N), axis=0)  # (BL,k,k,e)
    # The Pallas path gathers from a bf16 table; apply the same rounding here so
    # the comparison isolates the kernel arithmetic (fold + matmul + LayerNorm).
    emb = emb.astype(jnp.bfloat16).astype(jnp.float32)
    x = jnp.transpose(emb, (0, 3, 1, 2))                                   # NCHW
    sig = jax.nn.sigmoid(params['alpha'])
    conv = jax.lax.conv_general_dilated(
        x, params['conv_w'], window_strides=(1, 1), padding='SAME',
        dimension_numbers=('NCHW', 'OIHW', 'NCHW'),
        precision=jax.lax.Precision.HIGHEST)
    conv = conv + params['conv_b'][None, :, None, None]
    x = sig * x + (1.0 - sig) * conv
    x = x.reshape(BL, -1)
    x = jnp.dot(x, params['proj_w'].T,
                precision=jax.lax.Precision.HIGHEST) + params['proj_b']
    mean = x.mean(-1, keepdims=True)
    var = ((x - mean) ** 2).mean(-1, keepdims=True)
    x = (x - mean) / jnp.sqrt(var + 1e-5) * params['ln_g'] + params['ln_b']
    return x.reshape(B, L, -1)


if __name__ == "__main__":
    vocab_size, dim, k = 16, 32, 3
    B, L = 2, 8

    key = jax.random.PRNGKey(0)
    kp, kt = jax.random.split(key)
    params, e_model = init_params(kp, vocab_size, dim, k)
    tokens = jax.random.randint(kt, (B, L, k, k), 0, vocab_size, dtype=jnp.int32)

    # One-time fold (outside the jitted forward -> no np.asarray on traced params).
    fused = fold_params(params, k=k)

    out = pxby_embed_forward(tokens, fused, k=k, tm=2048)
    out = jax.block_until_ready(out)

    ref = jax.block_until_ready(pxby_embed_reference(tokens, params, k=k))
    assert out.shape == (B, L, dim)
    np.testing.assert_allclose(np.asarray(out), np.asarray(ref), rtol=5e-4, atol=5e-4)

    print("KERNEL_OK")
</pallas_src>

<mosaic_0001>
module attributes {stable_mosaic.version = 11 : i64} {
  func.func @pxby_kernel(%arg0: i32, %arg1: memref<16x128xbf16, #tpu.memory_space<vmem>>, %arg2: memref<128x32xbf16, #tpu.memory_space<vmem>>, %arg3: memref<128x32xbf16, #tpu.memory_space<vmem>>, %arg4: memref<1x32xf32, #tpu.memory_space<vmem>>, %arg5: memref<1x32xf32, #tpu.memory_space<vmem>>, %arg6: memref<1x32xf32, #tpu.memory_space<vmem>>, %arg7: memref<16x32xf32, #tpu.memory_space<vmem>>) attributes {dimension_semantics = [#tpu.dimension_semantics<parallel>], iteration_bounds = array<i64: 1>, scalar_prefetch = 0 : i64, scratch_operands = 0 : i64, tpu.core_type = #tpu.core_type<tc>, window_params = [{transform_indices = @transform_0, window_bounds = array<i64: 16, 128>}, {pipeline_mode = #tpu.pipeline_mode<synchronous>, transform_indices = @transform_1, window_bounds = array<i64: 128, 32>}, {pipeline_mode = #tpu.pipeline_mode<synchronous>, transform_indices = @transform_2, window_bounds = array<i64: 128, 32>}, {pipeline_mode = #tpu.pipeline_mode<synchronous>, transform_indices = @transform_3, window_bounds = array<i64: 1, 32>}, {pipeline_mode = #tpu.pipeline_mode<synchronous>, transform_indices = @transform_4, window_bounds = array<i64: 1, 32>}, {pipeline_mode = #tpu.pipeline_mode<synchronous>, transform_indices = @transform_5, window_bounds = array<i64: 1, 32>}, {transform_indices = @transform_6, window_bounds = array<i64: 16, 32>}]} {
    %c0 = arith.constant 0 : index
    %c0_0 = arith.constant 0 : index
    %0 = vector.load %arg1[%c0, %c0_0] : memref<16x128xbf16, #tpu.memory_space<vmem>>, vector<16x128xbf16>
    %c0_1 = arith.constant 0 : index
    %c0_2 = arith.constant 0 : index
    %1 = vector.load %arg2[%c0_1, %c0_2] : memref<128x32xbf16, #tpu.memory_space<vmem>>, vector<128x32xbf16>
    %cst = arith.constant dense<0.000000e+00> : vector<16x32xf32>
    %2 = tpu.matmul %0, %1, %cst {dimension_numbers = #tpu.dot_dimension_numbers<[1], [0], [0], [1], [0, 0, 1, 1], [], []>} : vector<16x128xbf16>, vector<128x32xbf16>, vector<16x32xf32> -> vector<16x32xf32>
    %c0_3 = arith.constant 0 : index
    %c0_4 = arith.constant 0 : index
    %3 = vector.load %arg3[%c0_3, %c0_4] : memref<128x32xbf16, #tpu.memory_space<vmem>>, vector<128x32xbf16>
    %cst_5 = arith.constant dense<0.000000e+00> : vector<16x32xf32>
    %4 = tpu.matmul %0, %3, %cst_5 {dimension_numbers = #tpu.dot_dimension_numbers<[1], [0], [0], [1], [0, 0, 1, 1], [], []>} : vector<16x128xbf16>, vector<128x32xbf16>, vector<16x32xf32> -> vector<16x32xf32>
    %5 = arith.addf %2, %4 : vector<16x32xf32>
    %c0_6 = arith.constant 0 : index
    %c0_7 = arith.constant 0 : index
    %6 = vector.load %arg4[%c0_6, %c0_7] : memref<1x32xf32, #tpu.memory_space<vmem>>, vector<1x32xf32>
    %7 = vector.broadcast %6 : vector<1x32xf32> to vector<16x32xf32>
    %8 = arith.addf %5, %7 : vector<16x32xf32>
    %cst_8 = arith.constant dense<0.000000e+00> : vector<16xf32>
    %9 = vector.multi_reduction <add>, %8, %cst_8 [1] : vector<16x32xf32> to vector<16xf32>
    %10 = vector.shape_cast %9 : vector<16xf32> to vector<16x1xf32>
    %cst_9 = arith.constant 3.200000e+01 : f32
    %11 = vector.broadcast %cst_9 : f32 to vector<16x1xf32>
    %12 = arith.divf %10, %11 : vector<16x1xf32>
    %13 = vector.broadcast %12 : vector<16x1xf32> to vector<16x32xf32>
    %14 = arith.subf %8, %13 : vector<16x32xf32>
    %15 = arith.mulf %14, %14 : vector<16x32xf32>
    %cst_10 = arith.constant dense<0.000000e+00> : vector<16xf32>
    %16 = vector.multi_reduction <add>, %15, %cst_10 [1] : vector<16x32xf32> to vector<16xf32>
    %17 = vector.shape_cast %16 : vector<16xf32> to vector<16x1xf32>
    %cst_11 = arith.constant 3.200000e+01 : f32
    %18 = vector.broadcast %cst_11 : f32 to vector<16x1xf32>
    %19 = arith.divf %17, %18 : vector<16x1xf32>
    %20 = vector.broadcast %12 : vector<16x1xf32> to vector<16x32xf32>
    %21 = arith.subf %8, %20 : vector<16x32xf32>
    %cst_12 = arith.constant 9.99999974E-6 : f32
    %22 = vector.broadcast %cst_12 : f32 to vector<16x1xf32>
    %23 = arith.addf %19, %22 : vector<16x1xf32>
    %24 = math.rsqrt %23 : vector<16x1xf32>
    %25 = vector.broadcast %24 : vector<16x1xf32> to vector<16x32xf32>
    %26 = arith.mulf %21, %25 : vector<16x32xf32>
    %c0_13 = arith.constant 0 : index
    %c0_14 = arith.constant 0 : index
    %27 = vector.load %arg5[%c0_13, %c0_14] : memref<1x32xf32, #tpu.memory_space<vmem>>, vector<1x32xf32>
    %28 = vector.broadcast %27 : vector<1x32xf32> to vector<16x32xf32>
    %29 = arith.mulf %26, %28 : vector<16x32xf32>
    %c0_15 = arith.constant 0 : index
    %c0_16 = arith.constant 0 : index
    %30 = vector.load %arg6[%c0_15, %c0_16] : memref<1x32xf32, #tpu.memory_space<vmem>>, vector<1x32xf32>
    %31 = vector.broadcast %30 : vector<1x32xf32> to vector<16x32xf32>
    %32 = arith.addf %29, %31 : vector<16x32xf32>
    %c0_17 = arith.constant 0 : index
    %c0_18 = arith.constant 0 : index
    %33 = vector.load %arg7[%c0_17, %c0_18] : memref<16x32xf32, #tpu.memory_space<vmem>>, vector<16x32xf32>
    tpu.vector_store %arg7[%c0_17, %c0_18], %32 {strides = array<i32>} : memref<16x32xf32, #tpu.memory_space<vmem>>, vector<16x32xf32>,
    return
  }
  func.func @transform_0(%arg0: i32) -> (i32, i32) {
    %c0_i32 = arith.constant 0 : i32
    %c0_i32_0 = arith.constant 0 : i32
    return %arg0, %c0_i32 : i32, i32
  }
  func.func @transform_1(%arg0: i32) -> (i32, i32) {
    %c0_i32 = arith.constant 0 : i32
    %c0_i32_0 = arith.constant 0 : i32
    %c0_i32_1 = arith.constant 0 : i32
    return %c0_i32, %c0_i32_0 : i32, i32
  }
  func.func @transform_2(%arg0: i32) -> (i32, i32) {
    %c0_i32 = arith.constant 0 : i32
    %c0_i32_0 = arith.constant 0 : i32
    %c0_i32_1 = arith.constant 0 : i32
    return %c0_i32, %c0_i32_0 : i32, i32
  }
  func.func @transform_3(%arg0: i32) -> (i32, i32) {
    %c0_i32 = arith.constant 0 : i32
    %c0_i32_0 = arith.constant 0 : i32
    %c0_i32_1 = arith.constant 0 : i32
    return %c0_i32, %c0_i32_0 : i32, i32
  }
  func.func @transform_4(%arg0: i32) -> (i32, i32) {
    %c0_i32 = arith.constant 0 : i32
    %c0_i32_0 = arith.constant 0 : i32
    %c0_i32_1 = arith.constant 0 : i32
    return %c0_i32, %c0_i32_0 : i32, i32
  }
  func.func @transform_5(%arg0: i32) -> (i32, i32) {
    %c0_i32 = arith.constant 0 : i32
    %c0_i32_0 = arith.constant 0 : i32
    %c0_i32_1 = arith.constant 0 : i32
    return %c0_i32, %c0_i32_0 : i32, i32
  }
  func.func @transform_6(%arg0: i32) -> (i32, i32) {
    %c0_i32 = arith.constant 0 : i32
    %c0_i32_0 = arith.constant 0 : i32
    return %arg0, %c0_i32 : i32, i32
  }
}

</mosaic_0001>

<bundles_post_ra>
// kernel: pxby_embed_forward.1
= control target key start
LH: loop header
LB: loop body
LE: loop exit
PB: predicated region body
PF: predicated region fallthrough
CT: control target
= control target key end

     0   :  { %s510_s0 = inlined_call_operand.vmem [shape: bf16[16,128], index: 0, kind: input, shape index: {}]   ;;  %s511_s1 = inlined_call_operand.vmem [shape: bf16[128,32], index: 1, kind: input, shape index: {}]   ;;  %s512_s2 = inlined_call_operand.vmem [shape: bf16[128,32], index: 2, kind: input, shape index: {}]   ;;  %s513_s3 = inlined_call_operand.vmem [shape: f32[1,32], index: 3, kind: input, shape index: {}]   ;;  %s514_s4 = inlined_call_operand.vmem [shape: f32[1,32], index: 4, kind: input, shape index: {}]   ;;  %s515_s5 = inlined_call_operand.vmem [shape: f32[1,32], index: 5, kind: input, shape index: {}]   ;;  %s516_s6 = inlined_call_operand.hbm [shape: f32[16,32], index: 6, kind: output, shape index: {}]  }
   0x1   :  { %v362_v0 = vld [vmem:[%s512_s2 + $0x38] sm:$0xff]  ;;  %v361_v2 = vld [vmem:[%s512_s2 + $0x30] sm:$0xff]  ;;  %v360_v4 = vld [vmem:[%s512_s2 + $0x28] sm:$0xff] }
   0x2   :  { %v354_v1 = vld [vmem:[%s511_s1 + $0x38] sm:$0xff]  ;;  %112 = vmatpush.bf16.msra.mxu0 %v362_v0  ;;  %v353_v3 = vld [vmem:[%s511_s1 + $0x30] sm:$0xff]  ;;  %v352_v5 = vld [vmem:[%s511_s1 + $0x28] sm:$0xff] }
   0x3   :  { %174 = vmatpush.bf16.msra.mxu1 %v354_v1 }
   0x6   :  { %113 = vmatpush.bf16.msra.mxu0 %v361_v2 }
   0x7   :  { %175 = vmatpush.bf16.msra.mxu1 %v353_v3 }
   0x8   :  { %11 = vsyncpa [#allocation3], 0  ;;  %v359_v6 = vld [vmem:[%s512_s2 + $0x20] sm:$0xff]  ;;  %v358_v8 = vld [vmem:[%s512_s2 + $0x18] sm:$0xff]  ;;  %vm194_vm0 = vcmask 261120   ;;  %v402_v28 = vmov 32.0  }
   0x9   :  { %v351_v7 = vld [vmem:[%s511_s1 + $0x20] sm:$0xff]  ;;  %v350_v9 = vld [vmem:[%s511_s1 + $0x18] sm:$0xff]  ;;  %v357_v10 = vld [vmem:[%s512_s2 + $0x10] sm:$0xff]  ;;  %370 = vrcp.f32 %v402_v28  ;;  %s266_s12 = sshll.u32 %s516_s6, 4  ;;  %s405_s13 = smov 8   ;;  %s267_s12 = int_to_ptr.hbm [resolvable:$true] %s266_s12 }
   0xa   :  { %114 = vmatpush.bf16.msra.mxu0 %v360_v4  ;;  %v349_v11 = vld [vmem:[%s511_s1 + $0x10] sm:$0xff]  ;;  %v356_v12 = vld [vmem:[%s512_s2 + $0x8] sm:$0xff]  ;;  %v355_v14 = vld [vmem:[%s512_s2] sm:$0xff] }
   0xb   :  { %176 = vmatpush.bf16.msra.mxu1 %v352_v5  ;;  %v348_v13 = vld [vmem:[%s511_s1 + $0x8] sm:$0xff]  ;;  %v347_v15 = vld [vmem:[%s511_s1] sm:$0xff] }
   0xc   :  { %v346_v16 = vld [vmem:[%s510_s0] sm:$0xff] }
   0xd   :  { %v367_v17 = vld [vmem:[%s513_s3] ss:$0 sm:$0xff] }
   0xe   :  { %115 = vmatpush.bf16.msra.mxu0 %v359_v6  ;;  %v368_v59 = vld [vmem:[%s514_s4] ss:$0 sm:$0xff]  ;;  %s403_s4 = smov [#allocation2]  }
   0xf   :  { %177 = vmatpush.bf16.msra.mxu1 %v351_v7  ;;  %v371_v29 = vpop.eup %370  ;;  %v369_v63 = vld [vmem:[%s515_s5] ss:$0 sm:$0xff]  ;;  %s264_s9 = sshll.u32 %s403_s4, 4  ;;  %s404_s5 = smov 128   ;;  %s265_s9 = int_to_ptr.vmem [resolvable:$true] %s264_s9 }
  0x10   :  { %v202_v30 = vmul.f32 32.0, %v371_v29  ;;  %vm206_vm1 = vweird.f32 %v371_v29 }
  0x12   :  { %116 = vmatpush.bf16.msra.mxu0 %v358_v8  ;;  %v203_v31 = vsub.f32 1.0, %v202_v30 }
  0x13   :  { %178 = vmatpush.bf16.msra.mxu1 %v350_v9 }
  0x14   :  { %v204_v32 = vmul.f32 %v371_v29, %v203_v31 }
  0x16   :  { %117 = vmatpush.bf16.msra.mxu0 %v357_v10  ;;  %v205_v33 = vadd.f32 %v371_v29, %v204_v32 }
  0x17   :  { %179 = vmatpush.bf16.msra.mxu1 %v349_v11 }
  0x18   :  { %v207_v34 = vsel %vm206_vm1, %v371_v29, %v205_v33 }
  0x1a   :  { %118 = vmatpush.bf16.msra.mxu0 %v356_v12 }
  0x1b   :  { %180 = vmatpush.bf16.msra.mxu1 %v348_v13 }
  0x1e   :  { %119 = vmatpush.bf16.msra.mxu0 %v355_v14 }
  0x1f   :  { %181 = vmatpush.bf16.msra.mxu1 %v347_v15 }
  0x21   :  { %120 = vmatmul.bf16.vlgmr.msra.gmra.mxu0 %v346_v16 }
  0x22   :  { %182 = vmatmul.bf16.vlgmr.msra.gmra.mxu1 %v346_v16 }
  0x9e   :  { %v121_v18 = vpop.f32.mrf.mxu0 }
  0x9f   :  { %v183_v19 = vpop.f32.mrf.mxu1 }
  0xa0   :  { %v184_v20 = vadd.f32 %v183_v19, %v121_v18 }
  0xa2   :  { %v192_v21 = vadd.f32 %v367_v17, %v184_v20 }
  0xa4   :  { %v195_v22 = vsel %vm194_vm0, %v192_v21, 0.0 }
  0xa5   :  { %196 = vadd.xlane.f32.xlu0 %v195_v22 }
  0xa6   :  { %v123_v23 = vpop.f32.mrf.mxu0 }
  0xa7   :  { %v185_v24 = vpop.f32.mrf.mxu1 }
  0xa8   :  { %v186_v25 = vadd.f32 %v185_v24, %v123_v23 }
  0xaa   :  { %v193_v26 = vadd.f32 %v367_v17, %v186_v25 }
  0xac   :  { %v198_v27 = vsel %vm194_vm0, %v193_v26, 0.0 }
  0xad   :  { %199 = vadd.xlane.f32.xlu0 %v198_v27 }
 0x118   :  { %v197_v35 = vpop.xlane.xlu0 %196 }
 0x119   :  { %v208_v36 = vmul.f32 %v207_v34, %v197_v35 }
 0x11b   :  { %v210_v37 = vsub.f32 %v192_v21, %v208_v36 }
 0x11d   :  { %v212_v38 = vmul.f32 %v210_v37, %v210_v37 }
 0x11f   :  { %v214_v39 = vsel %vm194_vm0, %v212_v38, 0.0 }
 0x120   :  { %215 = vadd.xlane.f32.xlu1 %v214_v39  ;;  %v200_v40 = vpop.xlane.xlu0 %199 }
 0x121   :  { %v209_v41 = vmul.f32 %v207_v34, %v200_v40 }
 0x123   :  { %v211_v42 = vsub.f32 %v193_v26, %v209_v41 }
 0x125   :  { %v213_v43 = vmul.f32 %v211_v42, %v211_v42 }
 0x127   :  { %v217_v44 = vsel %vm194_vm0, %v213_v43, 0.0 }
 0x128   :  { %218 = vadd.xlane.f32.xlu1 %v217_v44 }
 0x193   :  { %v216_v45 = vpop.xlane.xlu1 %215 }
 0x194   :  { %v220_v46 = vmul.f32 %v216_v45, %v207_v34 }
 0x196   :  { %v222_v47 = vadd.f32 1e-05, %v220_v46 }
 0x198   :  { %372 = vrsqrt.f32 %v222_v47  ;;  %vm230_vm3 = vweird.f32 %v222_v47 }
 0x19b   :  { %v219_v48 = vpop.xlane.xlu1 %218 }
 0x19c   :  { %v221_v49 = vmul.f32 %v219_v48, %v207_v34 }
 0x19e   :  { %v373_v50 = vpop.eup %372  ;;  %v223_v51 = vadd.f32 1e-05, %v221_v49 }
 0x19f   :  { %v225_v52 = vmul.f32 %v373_v50, %v222_v47  ;;  %vm231_vm2 = vweird.f32 %v373_v50 }
 0x1a0   :  { %374 = vrsqrt.f32 %v223_v51  ;;  %vm232_vm4 = vmor %vm230_vm3, %vm231_vm2  ;;  %vm240_vm6 = vweird.f32 %v223_v51 }
 0x1a1   :  { %v226_v53 = vmul.f32 %v373_v50, %v225_v52 }
 0x1a3   :  { %v227_v54 = vmul.f32 0.5, %v226_v53 }
 0x1a5   :  { %v228_v55 = vsub.f32 1.5, %v227_v54 }
 0x1a6   :  { %v375_v56 = vpop.eup %374 }
 0x1a7   :  { %v229_v57 = vmul.f32 %v373_v50, %v228_v55  ;;  %v235_v58 = vmul.f32 %v375_v56, %v223_v51  ;;  %vm241_vm5 = vweird.f32 %v375_v56 }
 0x1a8   :  { %vm242_vm7 = vmor %vm240_vm6, %vm241_vm5 }
 0x1a9   :  { %v233_v60 = vsel %vm232_vm4, %v373_v50, %v229_v57  ;;  %v236_v61 = vmul.f32 %v375_v56, %v235_v58 }
 0x1aa   :  { %v244_v62 = vmul.f32 %v233_v60, %v210_v37 }
 0x1ab   :  { %v237_v0 = vmul.f32 0.5, %v236_v61 }
 0x1ac   :  { %v250_v1 = vmul.f32 %v368_v59, %v244_v62 }
 0x1ad   :  { %v238_v2 = vsub.f32 1.5, %v237_v0 }
 0x1ae   :  { %v256_v3 = vadd.f32 %v369_v63, %v250_v1 }
 0x1af   :  { %v239_v4 = vmul.f32 %v375_v56, %v238_v2 }
 0x1b0   :  { %258 = vst.msk [vmem:[#allocation2] sm:$0xff] %vm194_vm0, %v256_v3 }
 0x1b1   :  { %v243_v5 = vsel %vm242_vm7, %v375_v56, %v239_v4 }
 0x1b2   :  { %v245_v6 = vmul.f32 %v243_v5, %v211_v42 }
 0x1b4   :  { %v251_v7 = vmul.f32 %v368_v59, %v245_v6 }
 0x1b6   :  { %v257_v8 = vadd.f32 %v369_v63, %v251_v7 }
 0x1b8   :  { %259 = vst.msk [vmem:[#allocation2 + $0x8] sm:$0xff] %vm194_vm0, %v257_v8 }
 0x1b9   :  { %272 = dma.vmem_to_hbm [thread:$0]  %s265_s9, 256, %s267_s12, [#allocation3], %s404_s5, %s404_s5, %s405_s13  }
 0x1ba   :  { %400 = dma.done.wait [#allocation3], 256  }
 0x1bb   :  { %401 = vsyncadd [#allocation3], 4294967040 }
 0x1bc   :  { %277 = vsyncpa [#allocation3], 1 }

</bundles_post_ra>
